<compile_context>
chip_gen: v5e
topology: v5e:2x2
jax: 0.10.0
libtpu: 0.0.40
codegen_flags: <defaults>
</compile_context>

<pallas_src>
import jax
import jax.numpy as jnp
from jax.experimental import pallas as pl
from jax.experimental.pallas import tpu as pltpu

LANE = 128
SUBLANE = 8


def _round_up(n: int, m: int) -> int:
    return (n + m - 1) // m * m


def mlp_kernel(x_ref, w1_ref, b1_ref, w2_ref, b2_ref, o_ref):
    # Layer 1 (LBAD, use_bn=False, activ='relu'): Linear -> ReLU.
    # Weights are pre-cast to bf16 at prep time; only the streamed x tile is cast here.
    x = x_ref[...].astype(jnp.bfloat16)
    h = jnp.dot(x, w1_ref[...], preferred_element_type=jnp.float32)
    h = jnp.maximum(h + b1_ref[...], 0.0)
    # Dropout is identity in eval mode.
    # Layer 2 (tail, use_tail_as_out=True): plain Linear, no activation.
    # NOTE: for very wide hidden dims (F1p >= ~2048) this full-tile h should be chunked
    # over F1p with an accumulator scratch; unnecessary at these sizes.
    y = jnp.dot(h.astype(jnp.bfloat16), w2_ref[...], preferred_element_type=jnp.float32)
    o_ref[...] = (y + b2_ref[...]).astype(o_ref.dtype)


def weight_norm_effective(v, g):
    """PyTorch nn.utils.weight_norm (dim=0): W = g * v / ||v|| per output row.

    v: [out, in], g: [out] -> effective weight [out, in].
    """
    norm = jnp.sqrt(jnp.sum(v * v, axis=1, keepdims=True))
    return (g[:, None] / norm) * v


def prepare_mlp_params(w1, b1, w2, b2):
    """One-time weight prep, hoisted out of the forward path.

    Takes effective (already weight-normed) PyTorch-layout weights w [out, in], b [out].
    Transposes to [in, out], zero-pads feature dims to multiples of 128 (lane-dense,
    unmasked stores, full MXU columns; zero padding keeps semantics exact), and pre-casts
    weights to bf16 (halves weight DMA + VMEM).  Biases stay f32 (added to f32 accumulator).
    """
    w1 = jnp.asarray(w1, jnp.float32).T   # [in0, out1]
    w2 = jnp.asarray(w2, jnp.float32).T   # [in1, out2]
    F0, F1 = w1.shape
    F1b, F2 = w2.shape
    assert F1b == F1, "layer shapes must chain"
    F1p = _round_up(F1, LANE)
    F2p = _round_up(F2, LANE)
    return {
        "w1": jnp.pad(w1, ((0, 0), (0, F1p - F1))).astype(jnp.bfloat16),
        "b1": jnp.pad(jnp.asarray(b1, jnp.float32), (0, F1p - F1)).reshape(1, F1p),
        "w2": jnp.pad(w2, ((0, F1p - F1), (0, F2p - F2))).astype(jnp.bfloat16),
        "b2": jnp.pad(jnp.asarray(b2, jnp.float32), (0, F2p - F2)).reshape(1, F2p),
        "out_features": F2,
    }


def mlp_forward(x, params, *, block_b=None, out_dtype=None, slice_output=True):
    """Fused 2-layer MLP forward: relu(x @ w1 + b1) @ w2 + b2 (prepared params, [in, out])."""
    B, F0 = x.shape
    w1, b1, w2, b2 = params["w1"], params["b1"], params["w2"], params["b2"]
    assert w1.shape[0] == F0
    F1p = w1.shape[1]
    F2p = w2.shape[1]
    F2 = params["out_features"]
    out_dtype = jnp.dtype(out_dtype or x.dtype)

    # Batch tile: multiple of 8 (sublane).  Aim for >= 2 grid steps so both v7x TensorCores
    # get work under dimension_semantics=("parallel",); cap at 1024 rows (v5e/v6e roofline
    # sweet spot for streamed tiles).
    if block_b is None:
        block_b = min(1024, max(SUBLANE, _round_up(pl.cdiv(B, 2), SUBLANE)))
    block_b = max(SUBLANE, _round_up(block_b, SUBLANE))
    grid_b = pl.cdiv(B, block_b)   # ragged last tile handled by Pallas (no x padding copy)

    # Explicit VMEM budget: single-buffered bf16 weights + f32 biases, double-buffered x/out
    # tiles, plus the in-body f32 hidden/output intermediates.  Raise the scoped limit (v5e
    # defaults to 16 MiB) but stay within v7x's 64 MiB physical VMEM.
    x_bytes = jnp.dtype(x.dtype).itemsize
    o_bytes = out_dtype.itemsize
    weight_bytes = (w1.size + w2.size) * 2 + (b1.size + b2.size) * 4
    stream_bytes = 2 * block_b * (F0 * x_bytes + F2p * o_bytes)
    body_bytes = block_b * (F1p + F2p) * 4 + block_b * F1p * 2
    vmem_needed = 2 * weight_bytes + stream_bytes + body_bytes
    vmem_limit = int(min(64 << 20, max(2 * vmem_needed + (8 << 20), 32 << 20)))

    cost = pl.CostEstimate(
        flops=2 * B * (F0 * F1p + F1p * F2p),
        transcendentals=0,
        bytes_accessed=B * F0 * x_bytes + weight_bytes + B * F2p * o_bytes,
    )

    def _resident_spec(shape, single_buffer):
        # Grid-invariant inputs: constant index_map keeps them VMEM-resident across the grid.
        if single_buffer:
            return pl.BlockSpec(shape, lambda i: (0, 0), pipeline_mode=pl.Buffered(1))
        return pl.BlockSpec(shape, lambda i: (0, 0))

    def _build(single_buffer):
        return pl.pallas_call(
            mlp_kernel,
            out_shape=jax.ShapeDtypeStruct((B, F2p), out_dtype),
            grid=(grid_b,),
            in_specs=[
                pl.BlockSpec((block_b, F0), lambda i: (i, 0)),   # x: streamed over batch
                _resident_spec((F0, F1p), single_buffer),        # weights/biases VMEM-resident
                _resident_spec((1, F1p), single_buffer),
                _resident_spec((F1p, F2p), single_buffer),
                _resident_spec((1, F2p), single_buffer),
            ],
            out_specs=pl.BlockSpec((block_b, F2p), lambda i: (i, 0)),
            compiler_params=pltpu.CompilerParams(
                dimension_semantics=("parallel",),   # batch axis is embarrassingly parallel
                vmem_limit_bytes=vmem_limit),
            cost_estimate=cost,
        )

    try:
        out = _build(single_buffer=True)(x, w1, b1, w2, b2)
    except Exception:
        # Fallback if this jax version rejects pl.Buffered(1) on pallas_call BlockSpecs.
        out = _build(single_buffer=False)(x, w1, b1, w2, b2)

    if slice_output and F2 != F2p:
        # Downstream here needs the exact [B, F2] shape; callers that can consume the padded
        # lane-dense slab (zero-padded columns) should pass slice_output=False to skip this copy.
        out = out[:, :F2]
    return out


def init_linear(key, in_feats, out_feats):
    """Deterministic init mimicking nn.Linear default (uniform +-1/sqrt(in))."""
    kw, kb = jax.random.split(key)
    bound = 1.0 / jnp.sqrt(in_feats)
    w = jax.random.uniform(kw, (out_feats, in_feats), jnp.float32, -bound, bound)
    b = jax.random.uniform(kb, (out_feats,), jnp.float32, -bound, bound)
    return w, b


if __name__ == "__main__":
    # MLP(n_features_list=[32, 16, 8], use_tail_as_out=True, drop_rate=0.2,
    #     use_bn=False, use_wn=True, activ='relu'); evaluated in eval mode
    # (dropout is identity), matching inference semantics.
    # TODO(synk): training-mode Dropout (drop_rate>0) not implemented; eval-mode identity used.
    n_features_list = [32, 16, 8]
    batch = 8

    key = jax.random.PRNGKey(0)
    kx, k1, k2 = jax.random.split(key, 3)

    x = jax.random.normal(kx, (batch, n_features_list[0]), jnp.float32)

    # Layer 1 (LBAD): weight-normed Linear(32 -> 16)
    v1, b1 = init_linear(k1, n_features_list[0], n_features_list[1])
    g1 = jnp.sqrt(jnp.sum(v1 * v1, axis=1))  # weight_norm init: g = ||v||
    w1_eff = weight_norm_effective(v1, g1)   # [16, 32]

    # Layer 2 (tail): weight-normed Linear(16 -> 8)
    v2, b2 = init_linear(k2, n_features_list[1], n_features_list[2])
    g2 = jnp.sqrt(jnp.sum(v2 * v2, axis=1))
    w2_eff = weight_norm_effective(v2, g2)   # [8, 16]

    # One-time weight prep (transpose / pad / bf16) -- NOT on the per-call forward path.
    params = prepare_mlp_params(w1_eff, b1, w2_eff, b2)

    out = mlp_forward(x, params)
    out = jax.block_until_ready(out)
    assert out.shape == (batch, n_features_list[-1])

    hi = jax.lax.Precision.HIGHEST

    # Tight check vs. a reference that mimics the kernel's bf16 MXU inputs / f32 accumulation.
    xb = x.astype(jnp.bfloat16).astype(jnp.float32)
    w1b = w1_eff.T.astype(jnp.bfloat16).astype(jnp.float32)
    w2b = w2_eff.T.astype(jnp.bfloat16).astype(jnp.float32)
    h_ref = jnp.maximum(jnp.dot(xb, w1b, precision=hi) + b1, 0.0)
    h_ref_b = h_ref.astype(jnp.bfloat16).astype(jnp.float32)
    ref_bf16 = jnp.dot(h_ref_b, w2b, precision=hi) + b2
    assert jnp.allclose(out, ref_bf16, atol=1e-4, rtol=1e-4)

    # Loose check vs. the full-f32 PyTorch-equivalent forward (bf16 cast error only).
    ref_f32 = jnp.dot(jnp.maximum(jnp.dot(x, w1_eff.T, precision=hi) + b1, 0.0),
                      w2_eff.T, precision=hi) + b2
    assert jnp.allclose(out, ref_f32, atol=5e-2, rtol=5e-2)

    print("KERNEL_OK")
</pallas_src>

<mosaic_0001>
module attributes {stable_mosaic.version = 11 : i64} {
  func.func @mlp_kernel(%arg0: i32, %arg1: memref<8x32xf32, #tpu.memory_space<vmem>>, %arg2: memref<32x128xbf16, #tpu.memory_space<vmem>>, %arg3: memref<1x128xf32, #tpu.memory_space<vmem>>, %arg4: memref<128x128xbf16, #tpu.memory_space<vmem>>, %arg5: memref<1x128xf32, #tpu.memory_space<vmem>>, %arg6: memref<8x128xf32, #tpu.memory_space<vmem>>) attributes {dimension_semantics = [#tpu.dimension_semantics<parallel>], iteration_bounds = array<i64: 1>, scalar_prefetch = 0 : i64, scratch_operands = 0 : i64, tpu.core_type = #tpu.core_type<tc>, window_params = [{transform_indices = @transform_0, window_bounds = array<i64: 8, 32>}, {pipeline_mode = #tpu.pipeline_mode<synchronous>, transform_indices = @transform_1, window_bounds = array<i64: 32, 128>}, {pipeline_mode = #tpu.pipeline_mode<synchronous>, transform_indices = @transform_2, window_bounds = array<i64: 1, 128>}, {pipeline_mode = #tpu.pipeline_mode<synchronous>, transform_indices = @transform_3, window_bounds = array<i64: 128, 128>}, {pipeline_mode = #tpu.pipeline_mode<synchronous>, transform_indices = @transform_4, window_bounds = array<i64: 1, 128>}, {transform_indices = @transform_5, window_bounds = array<i64: 8, 128>}]} {
    %c0 = arith.constant 0 : index
    %c0_0 = arith.constant 0 : index
    %0 = vector.load %arg1[%c0, %c0_0] : memref<8x32xf32, #tpu.memory_space<vmem>>, vector<8x32xf32>
    %1 = arith.truncf %0 : vector<8x32xf32> to vector<8x32xbf16>
    %c0_1 = arith.constant 0 : index
    %c0_2 = arith.constant 0 : index
    %2 = vector.load %arg2[%c0_1, %c0_2] : memref<32x128xbf16, #tpu.memory_space<vmem>>, vector<32x128xbf16>
    %cst = arith.constant dense<0.000000e+00> : vector<8x128xf32>
    %3 = tpu.matmul %1, %2, %cst {dimension_numbers = #tpu.dot_dimension_numbers<[1], [0], [0], [1], [0, 0, 1, 1], [], []>} : vector<8x32xbf16>, vector<32x128xbf16>, vector<8x128xf32> -> vector<8x128xf32>
    %c0_3 = arith.constant 0 : index
    %c0_4 = arith.constant 0 : index
    %4 = vector.load %arg3[%c0_3, %c0_4] : memref<1x128xf32, #tpu.memory_space<vmem>>, vector<1x128xf32>
    %5 = vector.broadcast %4 : vector<1x128xf32> to vector<8x128xf32>
    %6 = arith.addf %3, %5 : vector<8x128xf32>
    %cst_5 = arith.constant 0.000000e+00 : f32
    %7 = vector.broadcast %cst_5 : f32 to vector<8x128xf32>
    %8 = arith.maximumf %6, %7 : vector<8x128xf32>
    %9 = arith.truncf %8 : vector<8x128xf32> to vector<8x128xbf16>
    %c0_6 = arith.constant 0 : index
    %c0_7 = arith.constant 0 : index
    %10 = vector.load %arg4[%c0_6, %c0_7] : memref<128x128xbf16, #tpu.memory_space<vmem>>, vector<128x128xbf16>
    %cst_8 = arith.constant dense<0.000000e+00> : vector<8x128xf32>
    %11 = tpu.matmul %9, %10, %cst_8 {dimension_numbers = #tpu.dot_dimension_numbers<[1], [0], [0], [1], [0, 0, 1, 1], [], []>} : vector<8x128xbf16>, vector<128x128xbf16>, vector<8x128xf32> -> vector<8x128xf32>
    %c0_9 = arith.constant 0 : index
    %c0_10 = arith.constant 0 : index
    %12 = vector.load %arg5[%c0_9, %c0_10] : memref<1x128xf32, #tpu.memory_space<vmem>>, vector<1x128xf32>
    %13 = vector.broadcast %12 : vector<1x128xf32> to vector<8x128xf32>
    %14 = arith.addf %11, %13 : vector<8x128xf32>
    %c0_11 = arith.constant 0 : index
    %c0_12 = arith.constant 0 : index
    %15 = vector.load %arg6[%c0_11, %c0_12] : memref<8x128xf32, #tpu.memory_space<vmem>>, vector<8x128xf32>
    tpu.vector_store %arg6[%c0_11, %c0_12], %14 {strides = array<i32>} : memref<8x128xf32, #tpu.memory_space<vmem>>, vector<8x128xf32>,
    return
  }
  func.func @transform_0(%arg0: i32) -> (i32, i32) {
    %c0_i32 = arith.constant 0 : i32
    %c0_i32_0 = arith.constant 0 : i32
    return %arg0, %c0_i32 : i32, i32
  }
  func.func @transform_1(%arg0: i32) -> (i32, i32) {
    %c0_i32 = arith.constant 0 : i32
    %c0_i32_0 = arith.constant 0 : i32
    %c0_i32_1 = arith.constant 0 : i32
    return %c0_i32, %c0_i32_0 : i32, i32
  }
  func.func @transform_2(%arg0: i32) -> (i32, i32) {
    %c0_i32 = arith.constant 0 : i32
    %c0_i32_0 = arith.constant 0 : i32
    %c0_i32_1 = arith.constant 0 : i32
    return %c0_i32, %c0_i32_0 : i32, i32
  }
  func.func @transform_3(%arg0: i32) -> (i32, i32) {
    %c0_i32 = arith.constant 0 : i32
    %c0_i32_0 = arith.constant 0 : i32
    %c0_i32_1 = arith.constant 0 : i32
    return %c0_i32, %c0_i32_0 : i32, i32
  }
  func.func @transform_4(%arg0: i32) -> (i32, i32) {
    %c0_i32 = arith.constant 0 : i32
    %c0_i32_0 = arith.constant 0 : i32
    %c0_i32_1 = arith.constant 0 : i32
    return %c0_i32, %c0_i32_0 : i32, i32
  }
  func.func @transform_5(%arg0: i32) -> (i32, i32) {
    %c0_i32 = arith.constant 0 : i32
    %c0_i32_0 = arith.constant 0 : i32
    return %arg0, %c0_i32 : i32, i32
  }
}

module attributes {stable_mosaic.version = 11 : i64} {
  func.func @mlp_kernel(%arg0: i32, %arg1: memref<8x32xf32, #tpu.memory_space<vmem>>, %arg2: memref<32x128xbf16, #tpu.memory_space<vmem>>, %arg3: memref<1x128xf32, #tpu.memory_space<vmem>>, %arg4: memref<128x128xbf16, #tpu.memory_space<vmem>>, %arg5: memref<1x128xf32, #tpu.memory_space<vmem>>, %arg6: memref<8x128xf32, #tpu.memory_space<vmem>>) attributes {dimension_semantics = [#tpu.dimension_semantics<parallel>], iteration_bounds = array<i64: 1>, scalar_prefetch = 0 : i64, scratch_operands = 0 : i64, tpu.core_type = #tpu.core_type<tc>, window_params = [{transform_indices = @transform_0, window_bounds = array<i64: 8, 32>}, {pipeline_mode = #tpu.pipeline_mode<synchronous>, transform_indices = @transform_1, window_bounds = array<i64: 32, 128>}, {pipeline_mode = #tpu.pipeline_mode<synchronous>, transform_indices = @transform_2, window_bounds = array<i64: 1, 128>}, {pipeline_mode = #tpu.pipeline_mode<synchronous>, transform_indices = @transform_3, window_bounds = array<i64: 128, 128>}, {pipeline_mode = #tpu.pipeline_mode<synchronous>, transform_indices = @transform_4, window_bounds = array<i64: 1, 128>}, {transform_indices = @transform_5, window_bounds = array<i64: 8, 128>}]} {
    %c0 = arith.constant 0 : index
    %c0_0 = arith.constant 0 : index
    %0 = vector.load %arg1[%c0, %c0_0] : memref<8x32xf32, #tpu.memory_space<vmem>>, vector<8x32xf32>
    %1 = arith.truncf %0 : vector<8x32xf32> to vector<8x32xbf16>
    %c0_1 = arith.constant 0 : index
    %c0_2 = arith.constant 0 : index
    %2 = vector.load %arg2[%c0_1, %c0_2] : memref<32x128xbf16, #tpu.memory_space<vmem>>, vector<32x128xbf16>
    %cst = arith.constant dense<0.000000e+00> : vector<8x128xf32>
    %3 = tpu.matmul %1, %2, %cst {dimension_numbers = #tpu.dot_dimension_numbers<[1], [0], [0], [1], [0, 0, 1, 1], [], []>} : vector<8x32xbf16>, vector<32x128xbf16>, vector<8x128xf32> -> vector<8x128xf32>
    %c0_3 = arith.constant 0 : index
    %c0_4 = arith.constant 0 : index
    %4 = vector.load %arg3[%c0_3, %c0_4] : memref<1x128xf32, #tpu.memory_space<vmem>>, vector<1x128xf32>
    %5 = vector.broadcast %4 : vector<1x128xf32> to vector<8x128xf32>
    %6 = arith.addf %3, %5 : vector<8x128xf32>
    %cst_5 = arith.constant 0.000000e+00 : f32
    %7 = vector.broadcast %cst_5 : f32 to vector<8x128xf32>
    %8 = arith.maximumf %6, %7 : vector<8x128xf32>
    %9 = arith.truncf %8 : vector<8x128xf32> to vector<8x128xbf16>
    %c0_6 = arith.constant 0 : index
    %c0_7 = arith.constant 0 : index
    %10 = vector.load %arg4[%c0_6, %c0_7] : memref<128x128xbf16, #tpu.memory_space<vmem>>, vector<128x128xbf16>
    %cst_8 = arith.constant dense<0.000000e+00> : vector<8x128xf32>
    %11 = tpu.matmul %9, %10, %cst_8 {dimension_numbers = #tpu.dot_dimension_numbers<[1], [0], [0], [1], [0, 0, 1, 1], [], []>} : vector<8x128xbf16>, vector<128x128xbf16>, vector<8x128xf32> -> vector<8x128xf32>
    %c0_9 = arith.constant 0 : index
    %c0_10 = arith.constant 0 : index
    %12 = vector.load %arg5[%c0_9, %c0_10] : memref<1x128xf32, #tpu.memory_space<vmem>>, vector<1x128xf32>
    %13 = vector.broadcast %12 : vector<1x128xf32> to vector<8x128xf32>
    %14 = arith.addf %11, %13 : vector<8x128xf32>
    %c0_11 = arith.constant 0 : index
    %c0_12 = arith.constant 0 : index
    %15 = vector.load %arg6[%c0_11, %c0_12] : memref<8x128xf32, #tpu.memory_space<vmem>>, vector<8x128xf32>
    tpu.vector_store %arg6[%c0_11, %c0_12], %14 {strides = array<i32>} : memref<8x128xf32, #tpu.memory_space<vmem>>, vector<8x128xf32>,
    return
  }
  func.func @transform_0(%arg0: i32) -> (i32, i32) {
    %c0_i32 = arith.constant 0 : i32
    %c0_i32_0 = arith.constant 0 : i32
    return %arg0, %c0_i32 : i32, i32
  }
  func.func @transform_1(%arg0: i32) -> (i32, i32) {
    %c0_i32 = arith.constant 0 : i32
    %c0_i32_0 = arith.constant 0 : i32
    %c0_i32_1 = arith.constant 0 : i32
    return %c0_i32, %c0_i32_0 : i32, i32
  }
  func.func @transform_2(%arg0: i32) -> (i32, i32) {
    %c0_i32 = arith.constant 0 : i32
    %c0_i32_0 = arith.constant 0 : i32
    %c0_i32_1 = arith.constant 0 : i32
    return %c0_i32, %c0_i32_0 : i32, i32
  }
  func.func @transform_3(%arg0: i32) -> (i32, i32) {
    %c0_i32 = arith.constant 0 : i32
    %c0_i32_0 = arith.constant 0 : i32
    %c0_i32_1 = arith.constant 0 : i32
    return %c0_i32, %c0_i32_0 : i32, i32
  }
  func.func @transform_4(%arg0: i32) -> (i32, i32) {
    %c0_i32 = arith.constant 0 : i32
    %c0_i32_0 = arith.constant 0 : i32
    %c0_i32_1 = arith.constant 0 : i32
    return %c0_i32, %c0_i32_0 : i32, i32
  }
  func.func @transform_5(%arg0: i32) -> (i32, i32) {
    %c0_i32 = arith.constant 0 : i32
    %c0_i32_0 = arith.constant 0 : i32
    return %arg0, %c0_i32 : i32, i32
  }
}

</mosaic_0001>

<bundles_post_ra>
// kernel: tpu_custom_call.1
= control target key start
LH: loop header
LB: loop body
LE: loop exit
PB: predicated region body
PF: predicated region fallthrough
CT: control target
= control target key end

     0   :  { %10 = vsyncpa [#allocation3], 0  ;;  %s423_s0 = inlined_call_operand.hbm [shape: f32[8,32], index: 0, kind: input, shape index: {}]   ;;  %s424_s1 = inlined_call_operand.hbm [shape: bf16[32,128], index: 1, kind: input, shape index: {}]   ;;  %s425_s2 = inlined_call_operand.vmem [shape: f32[1,128], index: 2, kind: input, shape index: {}]   ;;  %s426_s3 = inlined_call_operand.hbm [shape: bf16[128,128], index: 3, kind: input, shape index: {}]   ;;  %s427_s4 = inlined_call_operand.vmem [shape: f32[1,128], index: 4, kind: input, shape index: {}]   ;;  %s428_s5 = inlined_call_operand.hbm [shape: f32[8,128], index: 5, kind: output, shape index: {}]  }
   0x1   :  { %11 = vsyncpa [#allocation6], 0  ;;  %s28_s20 = sshll.u32 %s424_s1, 4  ;;  %s29_s20 = int_to_ptr.hbm [resolvable:$true] %s28_s20 }
   0x2   :  { %12 = vsyncpa [#allocation4], 0  ;;  %s369_s21 = smov [#allocation5]   ;;  %s18_s25 = sshll.u32 %s423_s0, 4  ;;  %s19_s25 = int_to_ptr.hbm [resolvable:$true] %s18_s25 }
   0x3   :  { %s30_s22 = sshll.u32 %s369_s21, 4  ;;  %s370_s26 = smov 64   ;;  %s31_s22 = int_to_ptr.vmem [resolvable:$true] %s30_s22 }
   0x4   :  { %s371_s27 = smov 4   ;;  %s372_s28 = smov [#allocation2]  }
   0x5   :  { %36 = dma.hbm_to_vmem [thread:$0]  %s29_s20, 256, %s31_s22, [#allocation6], %s370_s26, %s370_s26, %s371_s27  }
   0x6   :  { %s20_s29 = sshll.u32 %s372_s28, 4  ;;  %s43_s7 = sshll.u32 %s426_s3, 4  ;;  %s21_s29 = int_to_ptr.vmem [resolvable:$true] %s20_s29  ;;  %s44_s7 = int_to_ptr.hbm [resolvable:$true] %s43_s7 }
   0x7   :  { %23 = dma.hbm_to_vmem [thread:$0]  %s19_s25, 128, %s21_s29, [#allocation3]  }
   0x8   :  { %s373_s1 = smov [#allocation7]  }
   0x9   :  { %s45_s8 = sshll.u32 %s373_s1, 4  ;;  %s46_s8 = int_to_ptr.vmem [resolvable:$true] %s45_s8 }
   0xa   :  { %51 = dma.hbm_to_vmem [thread:$0]  %s44_s7, 1024, %s46_s8, [#allocation6], %s370_s26, %s370_s26, %s371_s27  }
   0xb   :  { %363 = dma.done.wait [#allocation3], 128  }
   0xc   :  { %364 = vsyncadd [#allocation3], 4294967168 }
   0xd   :  { %365 = dma.done.wait [#allocation6], 1280  }
   0xe   :  { %366 = vsyncadd [#allocation6], 4294966016  ;;  %v250_v0 = vld [vmem:[#allocation5 + $0x8] sm:$0xff]  ;;  %v249_v2 = vld [vmem:[#allocation5] sm:$0xff]  ;;  %vm89_vm0 = vcmask 261120   ;;  %s374_s11 = smov [#allocation8]  }
   0xf   :  { %v258_v1 = vld [vmem:[#allocation7 + $0x38] sm:$0xff]  ;;  %99 = vmatpush.bf16.msra.mxu0 %v250_v0  ;;  %v67_v3 = vld [vmem:[#allocation2] sm:$0xff]  ;;  %v257_v4 = vld [vmem:[#allocation7 + $0x30] sm:$0xff]  ;;  %s195_s12 = sshll.u32 %s374_s11, 4  ;;  %s197_s15 = sshll.u32 %s428_s5, 4  ;;  %s196_s12 = int_to_ptr.vmem [resolvable:$true] %s195_s12  ;;  %s198_s15 = int_to_ptr.hbm [resolvable:$true] %s197_s15 }
  0x10   :  { %176 = vmatpush.bf16.msra.mxu1 %v258_v1  ;;  %v68_v5 = vpack.c.bf16 %v67_v3, %v67_v3  ;;  %v256_v6 = vld [vmem:[#allocation7 + $0x28] sm:$0xff]  ;;  %v255_v7 = vld [vmem:[#allocation7 + $0x20] sm:$0xff]  ;;  %v254_v8 = vld [vmem:[#allocation7 + $0x18] sm:$0xff] }
  0x11   :  { %v253_v9 = vld [vmem:[#allocation7 + $0x10] sm:$0xff]  ;;  %v252_v10 = vld [vmem:[#allocation7 + $0x8] sm:$0xff]  ;;  %v251_v11 = vld [vmem:[#allocation7] sm:$0xff] }
  0x12   :  { %v265_v12 = vld [vmem:[%s425_s2] ss:$0 sm:$0xff] }
  0x13   :  { %100 = vmatpush.bf16.msra.mxu0 %v249_v2  ;;  %v266_v18 = vld [vmem:[%s427_s4] ss:$0 sm:$0xff] }
  0x14   :  { %177 = vmatpush.bf16.msra.mxu1 %v257_v4 }
  0x16   :  { %216 = vmatmul.msk.bf16.vlgmr.msra.gmra.mxu0 %vm89_vm0, %v68_v5 }
  0x18   :  { %178 = vmatpush.bf16.msra.mxu1 %v256_v6 }
  0x1c   :  { %179 = vmatpush.bf16.msra.mxu1 %v255_v7 }
  0x20   :  { %180 = vmatpush.bf16.msra.mxu1 %v254_v8 }
  0x24   :  { %181 = vmatpush.bf16.msra.mxu1 %v253_v9 }
  0x28   :  { %182 = vmatpush.bf16.msra.mxu1 %v252_v10 }
  0x2c   :  { %183 = vmatpush.bf16.msra.mxu1 %v251_v11 }
  0x93   :  { %v102_v13 = vpop.f32.mrf.mxu0 }
  0x94   :  { %v103_v14 = vadd.f32 %v265_v12, %v102_v13 }
  0x96   :  { %v106_v15 = vmax.f32 %v103_v14, 0.0 }
  0x98   :  { %v107_v16 = vpack.c.bf16 %v106_v15, %v106_v15 }
  0x9a   :  { %184 = vmatmul.bf16.vlgmr.msra.gmra.mxu1 %v107_v16 }
  0x9b   :  { %v104_v17 = vpop.f32.mrf.mxu0 }
 0x117   :  { %v185_v19 = vpop.f32.mrf.mxu1 }
 0x118   :  { %v186_v20 = vadd.f32 %v266_v18, %v185_v19 }
 0x11a   :  { %189 = vst [vmem:[#allocation8] sm:$0xff] %v186_v20 }
 0x11b   :  { %200 = dma.vmem_to_hbm [thread:$0]  %s196_s12, 128, %s198_s15, [#allocation4]  }
 0x11f   :  { %v187_v21 = vpop.f32.mrf.mxu1 }
 0x120   :  { %367 = dma.done.wait [#allocation4], 128  }
 0x121   :  { %368 = vsyncadd [#allocation4], 4294967168 }
 0x122   :  { %205 = vsyncpa [#allocation3], 1 }
 0x123   :  { %206 = vsyncpa [#allocation6], 1 }
 0x124   :  { %207 = vsyncpa [#allocation4], 1 }

// kernel: tpu_custom_call.1
= control target key start
LH: loop header
LB: loop body
LE: loop exit
PB: predicated region body
PF: predicated region fallthrough
CT: control target
= control target key end

     0   :  { %10 = vsyncpa [#allocation3], 0  ;;  %s423_s0 = inlined_call_operand.hbm [shape: f32[8,32], index: 0, kind: input, shape index: {}]   ;;  %s424_s1 = inlined_call_operand.hbm [shape: bf16[32,128], index: 1, kind: input, shape index: {}]   ;;  %s425_s2 = inlined_call_operand.vmem [shape: f32[1,128], index: 2, kind: input, shape index: {}]   ;;  %s426_s3 = inlined_call_operand.hbm [shape: bf16[128,128], index: 3, kind: input, shape index: {}]   ;;  %s427_s4 = inlined_call_operand.vmem [shape: f32[1,128], index: 4, kind: input, shape index: {}]   ;;  %s428_s5 = inlined_call_operand.hbm [shape: f32[8,128], index: 5, kind: output, shape index: {}]  }
   0x1   :  { %11 = vsyncpa [#allocation6], 0  ;;  %s28_s20 = sshll.u32 %s424_s1, 4  ;;  %s29_s20 = int_to_ptr.hbm [resolvable:$true] %s28_s20 }
   0x2   :  { %12 = vsyncpa [#allocation4], 0  ;;  %s369_s21 = smov [#allocation5]   ;;  %s18_s25 = sshll.u32 %s423_s0, 4  ;;  %s19_s25 = int_to_ptr.hbm [resolvable:$true] %s18_s25 }
   0x3   :  { %s30_s22 = sshll.u32 %s369_s21, 4  ;;  %s370_s26 = smov 64   ;;  %s31_s22 = int_to_ptr.vmem [resolvable:$true] %s30_s22 }
   0x4   :  { %s371_s27 = smov 4   ;;  %s372_s28 = smov [#allocation2]  }
   0x5   :  { %36 = dma.hbm_to_vmem [thread:$0]  %s29_s20, 256, %s31_s22, [#allocation6], %s370_s26, %s370_s26, %s371_s27  }
   0x6   :  { %s20_s29 = sshll.u32 %s372_s28, 4  ;;  %s43_s7 = sshll.u32 %s426_s3, 4  ;;  %s21_s29 = int_to_ptr.vmem [resolvable:$true] %s20_s29  ;;  %s44_s7 = int_to_ptr.hbm [resolvable:$true] %s43_s7 }
   0x7   :  { %23 = dma.hbm_to_vmem [thread:$0]  %s19_s25, 128, %s21_s29, [#allocation3]  }
   0x8   :  { %s373_s1 = smov [#allocation7]  }
   0x9   :  { %s45_s8 = sshll.u32 %s373_s1, 4  ;;  %s46_s8 = int_to_ptr.vmem [resolvable:$true] %s45_s8 }
   0xa   :  { %51 = dma.hbm_to_vmem [thread:$0]  %s44_s7, 1024, %s46_s8, [#allocation6], %s370_s26, %s370_s26, %s371_s27  }
   0xb   :  { %363 = dma.done.wait [#allocation3], 128  }
   0xc   :  { %364 = vsyncadd [#allocation3], 4294967168 }
   0xd   :  { %365 = dma.done.wait [#allocation6], 1280  }
   0xe   :  { %366 = vsyncadd [#allocation6], 4294966016  ;;  %v250_v0 = vld [vmem:[#allocation5 + $0x8] sm:$0xff]  ;;  %v249_v2 = vld [vmem:[#allocation5] sm:$0xff]  ;;  %vm89_vm0 = vcmask 261120   ;;  %s374_s11 = smov [#allocation8]  }
   0xf   :  { %v258_v1 = vld [vmem:[#allocation7 + $0x38] sm:$0xff]  ;;  %99 = vmatpush.bf16.msra.mxu0 %v250_v0  ;;  %v67_v3 = vld [vmem:[#allocation2] sm:$0xff]  ;;  %v257_v4 = vld [vmem:[#allocation7 + $0x30] sm:$0xff]  ;;  %s195_s12 = sshll.u32 %s374_s11, 4  ;;  %s197_s15 = sshll.u32 %s428_s5, 4  ;;  %s196_s12 = int_to_ptr.vmem [resolvable:$true] %s195_s12  ;;  %s198_s15 = int_to_ptr.hbm [resolvable:$true] %s197_s15 }
  0x10   :  { %176 = vmatpush.bf16.msra.mxu1 %v258_v1  ;;  %v68_v5 = vpack.c.bf16 %v67_v3, %v67_v3  ;;  %v256_v6 = vld [vmem:[#allocation7 + $0x28] sm:$0xff]  ;;  %v255_v7 = vld [vmem:[#allocation7 + $0x20] sm:$0xff]  ;;  %v254_v8 = vld [vmem:[#allocation7 + $0x18] sm:$0xff] }
  0x11   :  { %v253_v9 = vld [vmem:[#allocation7 + $0x10] sm:$0xff]  ;;  %v252_v10 = vld [vmem:[#allocation7 + $0x8] sm:$0xff]  ;;  %v251_v11 = vld [vmem:[#allocation7] sm:$0xff] }
  0x12   :  { %v265_v12 = vld [vmem:[%s425_s2] ss:$0 sm:$0xff] }
  0x13   :  { %100 = vmatpush.bf16.msra.mxu0 %v249_v2  ;;  %v266_v18 = vld [vmem:[%s427_s4] ss:$0 sm:$0xff] }
  0x14   :  { %177 = vmatpush.bf16.msra.mxu1 %v257_v4 }
  0x16   :  { %216 = vmatmul.msk.bf16.vlgmr.msra.gmra.mxu0 %vm89_vm0, %v68_v5 }
  0x18   :  { %178 = vmatpush.bf16.msra.mxu1 %v256_v6 }
  0x1c   :  { %179 = vmatpush.bf16.msra.mxu1 %v255_v7 }
  0x20   :  { %180 = vmatpush.bf16.msra.mxu1 %v254_v8 }
  0x24   :  { %181 = vmatpush.bf16.msra.mxu1 %v253_v9 }
  0x28   :  { %182 = vmatpush.bf16.msra.mxu1 %v252_v10 }
  0x2c   :  { %183 = vmatpush.bf16.msra.mxu1 %v251_v11 }
  0x93   :  { %v102_v13 = vpop.f32.mrf.mxu0 }
  0x94   :  { %v103_v14 = vadd.f32 %v265_v12, %v102_v13 }
  0x96   :  { %v106_v15 = vmax.f32 %v103_v14, 0.0 }
  0x98   :  { %v107_v16 = vpack.c.bf16 %v106_v15, %v106_v15 }
  0x9a   :  { %184 = vmatmul.bf16.vlgmr.msra.gmra.mxu1 %v107_v16 }
  0x9b   :  { %v104_v17 = vpop.f32.mrf.mxu0 }
 0x117   :  { %v185_v19 = vpop.f32.mrf.mxu1 }
 0x118   :  { %v186_v20 = vadd.f32 %v266_v18, %v185_v19 }
 0x11a   :  { %189 = vst [vmem:[#allocation8] sm:$0xff] %v186_v20 }
 0x11b   :  { %200 = dma.vmem_to_hbm [thread:$0]  %s196_s12, 128, %s198_s15, [#allocation4]  }
 0x11f   :  { %v187_v21 = vpop.f32.mrf.mxu1 }
 0x120   :  { %367 = dma.done.wait [#allocation4], 128  }
 0x121   :  { %368 = vsyncadd [#allocation4], 4294967168 }
 0x122   :  { %205 = vsyncpa [#allocation3], 1 }
 0x123   :  { %206 = vsyncpa [#allocation6], 1 }
 0x124   :  { %207 = vsyncpa [#allocation4], 1 }

</bundles_post_ra>
